<compile_context>
chip_gen: v5e
topology: v5e:2x2
jax: 0.10.0
libtpu: 0.0.40
codegen_flags: <defaults>
</compile_context>

<pallas_src>
import jax
import jax.numpy as jnp
from jax.experimental import pallas as pl
from jax.experimental.pallas import tpu as pltpu


def _round_up(n, m):
    return ((n + m - 1) // m) * m


# ---------------------------------------------------------------------------
# Kernel: one batch tile per grid step.
#   x_ref:  (TB, D_in)        f32, tiled over batch (pipelined)
#   w1_ref: (D_in, H_pad)     f32, VMEM-resident (single-buffered)
#   b1_ref: (1, H_pad)        f32, resident
#   w2_ref: (H_pad, D_out_pad)f32, resident (padded cols are zero)
#   b2_ref: (1, D_out_pad)    f32, resident (padded lanes are -1e30 -> softmax drops them)
#   out_ref:(TB, D_out_pad)   f32, tiled over batch
# ---------------------------------------------------------------------------
def feedforward_kernel(x_ref, w1_ref, b1_ref, w2_ref, b2_ref, out_ref):
    x = x_ref[...]                                                      # (TB, D_in)

    # Layer 1: Linear + ReLU (f32 accumulate).
    h = jnp.dot(x, w1_ref[...], preferred_element_type=jnp.float32)    # (TB, H_pad)
    h = jnp.maximum(h + b1_ref[...], 0.0)

    # Layer 2: Linear. Padded hidden lanes are exactly zero; padded output lanes get a
    # -1e30 bias from the wrapper, so they vanish from the softmax without any mask op.
    logits = jnp.dot(h, w2_ref[...], preferred_element_type=jnp.float32)
    logits = logits + b2_ref[...]                                       # (TB, D_out_pad)

    # Numerically stable softmax over the lane-dense last dim (exact normalization).
    m = jnp.max(logits, axis=-1, keepdims=True)
    e = jnp.exp(logits - m)
    denom = jnp.sum(e, axis=-1, keepdims=True)
    out_ref[...] = (e / denom).astype(out_ref.dtype)


# ---------------------------------------------------------------------------
# One-time parameter preparation (hoisted out of the per-call path).
# ---------------------------------------------------------------------------
def prepare_feedforward_params(w1, b1, w2, b2):
    """w1: (D_in, H), b1: (1, H), w2: (H, D_out), b2: (1, D_out)  (PyTorch W.T layout)."""
    D_in, H = w1.shape
    D_out = w2.shape[1]
    H_pad = _round_up(max(H, 1), 128)
    D_out_pad = _round_up(max(D_out, 1), 128)

    w1_p = jnp.zeros((D_in, H_pad), jnp.float32).at[:, :H].set(w1.astype(jnp.float32))
    b1_p = jnp.zeros((1, H_pad), jnp.float32).at[:, :H].set(
        jnp.reshape(b1, (1, H)).astype(jnp.float32))
    w2_p = jnp.zeros((H_pad, D_out_pad), jnp.float32).at[:H, :D_out].set(
        w2.astype(jnp.float32))
    # Large negative (finite) bias on padded output lanes: exp underflows to 0 exactly.
    b2_p = jnp.full((1, D_out_pad), -1e30, jnp.float32).at[:, :D_out].set(
        jnp.reshape(b2, (1, D_out)).astype(jnp.float32))

    return dict(w1=w1_p, b1=b1_p, w2=w2_p, b2=b2_p,
                d_in=D_in, d_out=D_out, h_pad=H_pad, d_out_pad=D_out_pad)


def _vmem_limit_bytes():
    # Leave headroom for compiler-internal scratch: never request full physical VMEM.
    cap = 64 * 1024 * 1024  # conservative fallback = v7x per-TensorCore VMEM
    try:
        cap = int(pltpu.get_tpu_info().vmem_capacity_bytes)
    except Exception:
        pass
    return min(int(cap * 0.85), 110 * 1024 * 1024)


def _vmem_bytes_estimate(tb, d_in, h_pad, d_out_pad):
    # Double-buffered activation tiles + single-buffered resident params + temporaries.
    act = 2 * tb * d_in * 4 + 2 * tb * d_out_pad * 4
    params = (d_in * h_pad + h_pad * d_out_pad + h_pad + d_out_pad) * 4
    tmp = tb * (h_pad + d_out_pad) * 4
    return act + params + tmp


def _choose_tb(batch, requested, d_in, h_pad, d_out_pad, vmem_limit):
    b8 = _round_up(max(batch, 1), 8)
    tb = 512 if requested is None else requested          # big default for v5e/v6e
    tb = max(8, min(_round_up(tb, 8), b8))
    # Keep >= 2 grid steps so dimension_semantics=("parallel",) can shard across
    # v7x's 2 TensorCores (on 1-TC parts a 2-step grid is still fine).
    if b8 // tb < 2 and b8 >= 16:
        tb = max(8, _round_up(pl.cdiv(b8, 2), 8))
    # Shrink until the working set fits the VMEM budget (matters on v7x's 64 MiB).
    while tb > 8 and _vmem_bytes_estimate(tb, d_in, h_pad, d_out_pad) > vmem_limit:
        tb = max(8, _round_up(tb // 2, 8))
    return tb


# ---------------------------------------------------------------------------
# Fused forward: x (B, D_in) f32 -> softmax probabilities (B, D_out) f32.
# ---------------------------------------------------------------------------
def feedforward(x, params, *, tb=None):
    B, D_in = x.shape
    assert D_in == params["d_in"]
    H_pad, D_out_pad, D_out = params["h_pad"], params["d_out_pad"], params["d_out"]

    vmem_limit = _vmem_limit_bytes()
    tb = _choose_tb(B, tb, D_in, H_pad, D_out_pad, vmem_limit)
    B_pad = _round_up(B, tb)

    # Only materialize a padded activation tensor when the tile does not divide B.
    if B_pad == B:
        x_p = x.astype(jnp.float32)
    else:
        x_p = jnp.zeros((B_pad, D_in), jnp.float32).at[:B, :].set(x)

    grid = (B_pad // tb,)

    def resident(shape):
        # Grid-invariant: never re-DMA'd, so single-buffer it (halves its VMEM footprint).
        return pl.BlockSpec(shape, lambda i: (0, 0), pipeline_mode=pl.Buffered(1))

    out_padded = pl.pallas_call(
        feedforward_kernel,
        out_shape=jax.ShapeDtypeStruct((B_pad, D_out_pad), jnp.float32),
        grid_spec=pltpu.PrefetchScalarGridSpec(
            num_scalar_prefetch=0,
            grid=grid,
            in_specs=[
                pl.BlockSpec((tb, D_in), lambda i: (i, 0)),      # pipelined activations
                resident((D_in, H_pad)),
                resident((1, H_pad)),
                resident((H_pad, D_out_pad)),
                resident((1, D_out_pad)),
            ],
            out_specs=pl.BlockSpec((tb, D_out_pad), lambda i: (i, 0)),
        ),
        compiler_params=pltpu.CompilerParams(
            dimension_semantics=("parallel",),   # batch tiles shard across TCs on v7x
            vmem_limit_bytes=vmem_limit,
        ),
    )(x_p, params["w1"], params["b1"], params["w2"], params["b2"])

    # Strip batch padding and padded output lanes.
    return out_padded[:B, :D_out]


if __name__ == "__main__":
    # FeedForwardConfig: n_hidden = 2, n_layer = 1 (single hidden layer).
    # input_size / output_size are unspecified in the config -> pick small ones.
    batch = 256
    input_size = 32
    n_hidden = 2
    output_size = 4

    key = jax.random.PRNGKey(0)
    k_x, k_w1, k_b1, k_w2, k_b2 = jax.random.split(key, 5)

    x = jax.random.normal(k_x, (batch, input_size), dtype=jnp.float32)

    # Deterministic parameter init (uniform, roughly matching nn.Linear scale).
    def init_linear(kw, kb, fan_in, fan_out):
        bound = 1.0 / jnp.sqrt(jnp.float32(fan_in))
        w = jax.random.uniform(kw, (fan_in, fan_out), jnp.float32, -bound, bound)
        b = jax.random.uniform(kb, (1, fan_out), jnp.float32, -bound, bound)
        return w, b

    w1, b1 = init_linear(k_w1, k_b1, input_size, n_hidden)
    w2, b2 = init_linear(k_w2, k_b2, n_hidden, output_size)

    # Parameter padding is done once here and reused for every forward call.
    params = prepare_feedforward_params(w1, b1, w2, b2)

    out = feedforward(x, params)
    out = jax.block_until_ready(out)

    # Pure-JAX f32 reference (matches PyTorch forward semantics).
    h_ref = jnp.maximum(jnp.dot(x, w1) + b1, 0.0)
    logits_ref = jnp.dot(h_ref, w2) + b2
    ref = jax.nn.softmax(logits_ref, axis=-1)

    assert out.shape == (batch, output_size)
    assert jnp.allclose(out, ref, atol=5e-3, rtol=5e-3)
    # Rows of a softmax sum to 1 (exact divide in-kernel).
    assert jnp.allclose(jnp.sum(out, axis=-1), jnp.ones((batch,)), atol=1e-3)

    # TODO(synk): cross-entropy loss branch (targets is not None) and the host-side
    # predict() utility are not implemented; inference returns probabilities only.
    print("KERNEL_OK")
</pallas_src>

<mosaic_0001>
module attributes {stable_mosaic.version = 11 : i64} {
  func.func @feedforward_kernel(%arg0: i32, %arg1: memref<128x32xf32, #tpu.memory_space<vmem>>, %arg2: memref<32x128xf32, #tpu.memory_space<vmem>>, %arg3: memref<1x128xf32, #tpu.memory_space<vmem>>, %arg4: memref<128x128xf32, #tpu.memory_space<vmem>>, %arg5: memref<1x128xf32, #tpu.memory_space<vmem>>, %arg6: memref<128x128xf32, #tpu.memory_space<vmem>>) attributes {dimension_semantics = [#tpu.dimension_semantics<parallel>], iteration_bounds = array<i64: 2>, scalar_prefetch = 0 : i64, scratch_operands = 0 : i64, tpu.core_type = #tpu.core_type<tc>, window_params = [{transform_indices = @transform_0, window_bounds = array<i64: 128, 32>}, {pipeline_mode = #tpu.pipeline_mode<synchronous>, transform_indices = @transform_1, window_bounds = array<i64: 32, 128>}, {pipeline_mode = #tpu.pipeline_mode<synchronous>, transform_indices = @transform_2, window_bounds = array<i64: 1, 128>}, {pipeline_mode = #tpu.pipeline_mode<synchronous>, transform_indices = @transform_3, window_bounds = array<i64: 128, 128>}, {pipeline_mode = #tpu.pipeline_mode<synchronous>, transform_indices = @transform_4, window_bounds = array<i64: 1, 128>}, {transform_indices = @transform_5, window_bounds = array<i64: 128, 128>}]} {
    %c0 = arith.constant 0 : index
    %c0_0 = arith.constant 0 : index
    %0 = vector.load %arg1[%c0, %c0_0] : memref<128x32xf32, #tpu.memory_space<vmem>>, vector<128x32xf32>
    %c0_1 = arith.constant 0 : index
    %c0_2 = arith.constant 0 : index
    %1 = vector.load %arg2[%c0_1, %c0_2] : memref<32x128xf32, #tpu.memory_space<vmem>>, vector<32x128xf32>
    %cst = arith.constant dense<0.000000e+00> : vector<128x128xf32>
    %2 = tpu.matmul %0, %1, %cst {dimension_numbers = #tpu.dot_dimension_numbers<[1], [0], [0], [1], [0, 0, 1, 1], [], []>} : vector<128x32xf32>, vector<32x128xf32>, vector<128x128xf32> -> vector<128x128xf32>
    %c0_3 = arith.constant 0 : index
    %c0_4 = arith.constant 0 : index
    %3 = vector.load %arg3[%c0_3, %c0_4] : memref<1x128xf32, #tpu.memory_space<vmem>>, vector<1x128xf32>
    %4 = vector.broadcast %3 : vector<1x128xf32> to vector<128x128xf32>
    %5 = arith.addf %2, %4 : vector<128x128xf32>
    %cst_5 = arith.constant 0.000000e+00 : f32
    %6 = vector.broadcast %cst_5 : f32 to vector<128x128xf32>
    %7 = arith.maximumf %5, %6 : vector<128x128xf32>
    %c0_6 = arith.constant 0 : index
    %c0_7 = arith.constant 0 : index
    %8 = vector.load %arg4[%c0_6, %c0_7] : memref<128x128xf32, #tpu.memory_space<vmem>>, vector<128x128xf32>
    %cst_8 = arith.constant dense<0.000000e+00> : vector<128x128xf32>
    %9 = tpu.matmul %7, %8, %cst_8 {dimension_numbers = #tpu.dot_dimension_numbers<[1], [0], [0], [1], [0, 0, 1, 1], [], []>} : vector<128x128xf32>, vector<128x128xf32>, vector<128x128xf32> -> vector<128x128xf32>
    %c0_9 = arith.constant 0 : index
    %c0_10 = arith.constant 0 : index
    %10 = vector.load %arg5[%c0_9, %c0_10] : memref<1x128xf32, #tpu.memory_space<vmem>>, vector<1x128xf32>
    %11 = vector.broadcast %10 : vector<1x128xf32> to vector<128x128xf32>
    %12 = arith.addf %9, %11 : vector<128x128xf32>
    %cst_11 = arith.constant dense<0xFF800000> : vector<128xf32>
    %13 = vector.multi_reduction <maximumf>, %12, %cst_11 [1] : vector<128x128xf32> to vector<128xf32>
    %14 = vector.shape_cast %13 : vector<128xf32> to vector<128x1xf32>
    %15 = vector.broadcast %14 : vector<128x1xf32> to vector<128x128xf32>
    %16 = arith.subf %12, %15 : vector<128x128xf32>
    %17 = math.exp %16 : vector<128x128xf32>
    %cst_12 = arith.constant dense<0.000000e+00> : vector<128xf32>
    %18 = vector.multi_reduction <add>, %17, %cst_12 [1] : vector<128x128xf32> to vector<128xf32>
    %19 = vector.shape_cast %18 : vector<128xf32> to vector<128x1xf32>
    %20 = vector.broadcast %19 : vector<128x1xf32> to vector<128x128xf32>
    %21 = arith.divf %17, %20 : vector<128x128xf32>
    %c0_13 = arith.constant 0 : index
    %c0_14 = arith.constant 0 : index
    %22 = vector.load %arg6[%c0_13, %c0_14] : memref<128x128xf32, #tpu.memory_space<vmem>>, vector<128x128xf32>
    tpu.vector_store %arg6[%c0_13, %c0_14], %21 {strides = array<i32>} : memref<128x128xf32, #tpu.memory_space<vmem>>, vector<128x128xf32>,
    return
  }
  func.func @transform_0(%arg0: i32) -> (i32, i32) {
    %c0_i32 = arith.constant 0 : i32
    %c0_i32_0 = arith.constant 0 : i32
    return %arg0, %c0_i32 : i32, i32
  }
  func.func @transform_1(%arg0: i32) -> (i32, i32) {
    %c0_i32 = arith.constant 0 : i32
    %c0_i32_0 = arith.constant 0 : i32
    %c0_i32_1 = arith.constant 0 : i32
    return %c0_i32, %c0_i32_0 : i32, i32
  }
  func.func @transform_2(%arg0: i32) -> (i32, i32) {
    %c0_i32 = arith.constant 0 : i32
    %c0_i32_0 = arith.constant 0 : i32
    %c0_i32_1 = arith.constant 0 : i32
    return %c0_i32, %c0_i32_0 : i32, i32
  }
  func.func @transform_3(%arg0: i32) -> (i32, i32) {
    %c0_i32 = arith.constant 0 : i32
    %c0_i32_0 = arith.constant 0 : i32
    %c0_i32_1 = arith.constant 0 : i32
    return %c0_i32, %c0_i32_0 : i32, i32
  }
  func.func @transform_4(%arg0: i32) -> (i32, i32) {
    %c0_i32 = arith.constant 0 : i32
    %c0_i32_0 = arith.constant 0 : i32
    %c0_i32_1 = arith.constant 0 : i32
    return %c0_i32, %c0_i32_0 : i32, i32
  }
  func.func @transform_5(%arg0: i32) -> (i32, i32) {
    %c0_i32 = arith.constant 0 : i32
    %c0_i32_0 = arith.constant 0 : i32
    return %arg0, %c0_i32 : i32, i32
  }
}

</mosaic_0001>

<bundles_post_ra>
// kernel: tpu_custom_call.1
= control target key start
LH: loop header
LB: loop body
LE: loop exit
PB: predicated region body
PF: predicated region fallthrough
CT: control target
= control target key end

     0   :  { %10 = vsyncpa [#allocation3], 0  ;;  %s1501_s0 = inlined_call_operand.vmem [shape: f32[256,32], index: 0, kind: input, shape index: {}]   ;;  %s1502_s1 = inlined_call_operand.vmem [shape: f32[32,128], index: 1, kind: input, shape index: {}]   ;;  %s1503_s2 = inlined_call_operand.vmem [shape: f32[1,128], index: 2, kind: input, shape index: {}]   ;;  %s1504_s3 = inlined_call_operand.vmem [shape: f32[128,128], index: 3, kind: input, shape index: {}]   ;;  %s1505_s4 = inlined_call_operand.vmem [shape: f32[1,128], index: 4, kind: input, shape index: {}]   ;;  %s1506_s5 = inlined_call_operand.hbm [shape: f32[256,128], index: 5, kind: output, shape index: {}]  }
   0x1   :  { %12 = vsyncpa [#allocation3 + $0x1], 0  ;;  %s1179_s18 = smov 0   ;;  %s1181_s19 = smov 0  }
   0x2   :  { %s1183_s20 = smov 0   ;;  %s1185_s21 = smov 0  }
   0x3 LB: > { %s1200_s22 = sadd.s32 4294967295, %s1145_s21   ;;  %s911_s23 = sadd.s32 4294967294, %s1145_s21   ;;  %s1145_s21 = sphi %s1185_s21, %s1512_s21   ;;  %s1141_s20 = sphi %s1183_s20, %s1511_s20   ;;  %s1137_s19 = sphi %s1181_s19, %s1510_s19   ;;  %s1133_s18 = sphi %s1179_s18, %s1509_s18  }
   0x4   : > { %s1204_s24 = sadd.s32 1, %s1145_s21   ;;  %s135_s25 = sadd.s32 1, %s1141_s20 }
   0x5   : > { %s132_s26 = ssub.s32 %s1145_s21, %s1204_s24  ;;  %p145_p0 = scmp.ne.s32.totalorder %s1141_s20, %s1137_s19 }
   0x6   : > { %p133_p1 = scmp.eq.s32.totalorder %s132_s26, 0  ;;  %p146_p2 = scmp.eq.s32.totalorder %s1200_s22, 1 }
   0x7   : > { %p151_p3 = scmp.ne.s32.totalorder %s1137_s19, %s1133_s18  ;;  %p152_p4 = scmp.eq.s32.totalorder %s911_s23, 1 }
   0x8   : > { %s1215_s27 = scalar_select %p133_p1, %s1141_s20, %s135_s25  }
   0x9   : > { %p1217_p5 = por %p146_p2, %p145_p0  ;;  %p1221_p6 = por %p152_p4, %p151_p3 }
   0xa   : > { %p914_p7 = scmp.ge.s32.totalorder %s1145_s21, 1  ;;  %p191_p8 = scmp.lt.s32.totalorder %s1145_s21, 3 }
   0xc   : > { %p192_p9 = pnand %p914_p7, %p191_p8 }
   0xd   : > { %s916_s9 = sshll.u32 (!%p192_p9), %s1200_s22, 4  ;;  %s216_s7 = sand.u32 (!%p192_p9), 1, %s1137_s19  }
   0xe   : > { %195 = sbr.rel (%p192_p9) target bundleno = 662 (0x296), region = 40  ;;  %p220_p10 = scmp.lt.s32.totalorder (!%p192_p9), %s916_s9, 31 }
   0xf   : > { %s915_s8 = sshll.u32 (!%p192_p9), %s216_s7, 7  ;;  %s939_s10 = sshll.u32 (!%p192_p9), %s1200_s22, 7 }
  0x10   : > { %s845_s13 = scalar_lea.hbm (!%p192_p9), %s1506_s5, %s939_s10  ;;  %s834_s15 = scalar_lea.sflag (!%p192_p9), [#allocation3], %s216_s7 }
  0x11   : > { %s1103_s26 = scalar_lea.hbm (!%p192_p9), %s1506_s5, 256 }
  0x13   : > { %v245_v0 = vld [vmem:[%s1502_s1 + $0x18] sm:$0xff]  ;;  %v244_v1 = vld [vmem:[%s1502_s1 + $0x10] sm:$0xff]  ;;  %v243_v2 = vld [vmem:[%s1502_s1 + $0x8] sm:$0xff]  ;;  %s1514_s9 = smov (!%p220_p10, %s916_s9), 31  ;;  %vm250_vm0 = vcmask 261120  }
  0x14   : > { %311 = vmatpush.msra.mxu0 %v245_v0  ;;  %940 = vmatpush.msra.mxu3 %v245_v0  ;;  %v242_v3 = vld [vmem:[%s1502_s1] sm:$0xff]  ;;  %s917_s14 = sshll.u32 %s1514_s9, 3  ;;  %v395_v13 = vld [vmem:[%s1504_s3 + $0x78] sm:$0xff]  ;;  %v394_v14 = vld [vmem:[%s1504_s3 + $0x70] sm:$0xff]  ;;  %s1427_s9 = scalar_lea.vmem [#allocation2], %s915_s8 }
  0x15   : > { %s1243_s17 = scalar_lea.vmem %s1501_s0, %s917_s14  ;;  %400 = vmatpush.msra.mxu1 %v395_v13  ;;  %944 = vmatpush.msra.mxu2 %v395_v13  ;;  %v393_v15 = vld [vmem:[%s1504_s3 + $0x68] sm:$0xff]  ;;  %v392_v17 = vld [vmem:[%s1504_s3 + $0x60] sm:$0xff]  ;;  %v391_v19 = vld [vmem:[%s1504_s3 + $0x58] sm:$0xff]  ;;  %s846_s22 = sshll.u32 %s1427_s9, 4  ;;  %s847_s22 = int_to_ptr.vmem [resolvable:$true] %s846_s22 }
  0x16   : > { %312 = vmatpush.msra.mxu0 %v244_v1  ;;  %941 = vmatpush.msra.mxu3 %v244_v1  ;;  %v226_v4 = vld [vmem:[%s1243_s17] sm:$0xff]  ;;  %v227_v5 = vld [vmem:[%s1243_s17 + $0x8] sm:$0xff]  ;;  %v228_v6 = vld [vmem:[%s1243_s17 + $0x10] sm:$0xff]  ;;  %s848_s14 = sshll.u32 %s845_s13, 4  ;;  %s849_s14 = int_to_ptr.hbm [resolvable:$true] %s848_s14 }
  0x17   : > { %v229_v7 = vld [vmem:[%s1243_s17 + $0x18] sm:$0xff]  ;;  %v236_v8 = vld [vmem:[%s1243_s17 + $0x50] sm:$0xff]  ;;  %v230_v9 = vld [vmem:[%s1243_s17 + $0x20] sm:$0xff]  ;;  %401 = vmatpush.msra.mxu1 %v394_v14  ;;  %946 = vmatpush.msra.mxu2 %v394_v14  ;;  %s1097_s16 = sshra.s32 %s849_s14, 4  ;;  %s1098_s16 = int_to_ptr.hbm [resolvable:$true] %s1097_s16 }
  0x18   : > { %313 = vmatpush.msra.mxu0 %v243_v2  ;;  %942 = vmatpush.msra.mxu3 %v243_v2  ;;  %v237_v10 = vld [vmem:[%s1243_s17 + $0x58] sm:$0xff]  ;;  %v231_v11 = vld [vmem:[%s1243_s17 + $0x28] sm:$0xff]  ;;  %v238_v12 = vld [vmem:[%s1243_s17 + $0x60] sm:$0xff]  ;;  %s1099_s23 = scalar_lea.hbm %s1098_s16, 128  ;;  %p1104_p0 = scmp.lt.s32.totalorder %s1098_s16, %s1506_s5 }
  0x19   : > { %v232_v16 = vld [vmem:[%s1243_s17 + $0x30] sm:$0xff]  ;;  %v239_v18 = vld [vmem:[%s1243_s17 + $0x68] sm:$0xff]  ;;  %402 = vmatpush.msra.mxu1 %v393_v15  ;;  %948 = vmatpush.msra.mxu2 %v393_v15  ;;  %v233_v22 = vld [vmem:[%s1243_s17 + $0x38] sm:$0xff]  ;;  %p1100_p11 = scmp.ne.s32.totalorder %s1098_s16, %s1099_s23  ;;  %p1105_p1 = scmp.lt.s32.totalorder %s1103_s26, %s1099_s23 }
  0x1a   : > { %314 = vmatpush.msra.mxu0 %v242_v3  ;;  %943 = vmatpush.msra.mxu3 %v242_v3  ;;  %v390_v20 = vld [vmem:[%s1504_s3 + $0x50] sm:$0xff]  ;;  %v389_v21 = vld [vmem:[%s1504_s3 + $0x48] sm:$0xff]  ;;  %v388_v23 = vld [vmem:[%s1504_s3 + $0x40] sm:$0xff] }
  0x1b   : > { %918 = vmatmul.msk.f32.vlgmr.msra.gmra.mxu0 %vm250_vm0, %v226_v4  ;;  %928 = vmatmul.msk.f32.vlgmr.msra.gmra.mxu3 %vm250_vm0, %v236_v8  ;;  %v240_v24 = vld [vmem:[%s1243_s17 + $0x70] sm:$0xff]  ;;  %v387_v25 = vld [vmem:[%s1504_s3 + $0x38] sm:$0xff]  ;;  %v385_v27 = vld [vmem:[%s1504_s3 + $0x28] sm:$0xff]  ;;  %p1101_p12 = pnand %p1100_p11, %p1217_p5  ;;  %p1106_p2 = por %p1105_p1, %p1104_p0 }
  0x1c   : > { %945 = vmatpush.msrb.mxu3 %v395_v13  ;;  %403 = vmatpush.msra.mxu1 %v392_v17  ;;  %v386_v26 = vld [vmem:[%s1504_s3 + $0x30] sm:$0xff]  ;;  %v234_v28 = vld [vmem:[%s1243_s17 + $0x40] sm:$0xff]  ;;  %v241_v30 = vld [vmem:[%s1243_s17 + $0x78] sm:$0xff] }
  0x1d   : > { %950 = vmatpush.msra.mxu2 %v392_v17  ;;  %v384_v29 = vld [vmem:[%s1504_s3 + $0x20] sm:$0xff]  ;;  %v383_v31 = vld [vmem:[%s1504_s3 + $0x18] sm:$0xff]  ;;  %v235_v32 = vld [vmem:[%s1243_s17 + $0x48] sm:$0xff]  ;;  %p1102_p13 = pneg %p1101_p12 }
  0x1e   : > { %947 = vmatpush.msrb.mxu3 %v394_v14  ;;  %404 = vmatpush.msra.mxu1 %v391_v19  ;;  %v382_v33 = vld [vmem:[%s1504_s3 + $0x10] sm:$0xff]  ;;  %v381_v34 = vld [vmem:[%s1504_s3 + $0x8] sm:$0xff]  ;;  %v380_v35 = vld [vmem:[%s1504_s3] sm:$0xff] }
  0x1f   : > { %952 = vmatpush.msra.mxu2 %v391_v19  ;;  %v1017_v36 = vld [vmem:[%s1503_s2] ss:$0 sm:$0xff]  ;;  %p1107_p3 = pnand %p1106_p2, %p1102_p13 }
  0x20   : > { %949 = vmatpush.msrb.mxu3 %v393_v15  ;;  %405 = vmatpush.msra.mxu1 %v390_v20 }
  0x21   : > { %954 = vmatpush.msra.mxu2 %v390_v20 }
  0x22   : > { %951 = vmatpush.msrb.mxu3 %v392_v17  ;;  %406 = vmatpush.msra.mxu1 %v389_v21 }
  0x23   : > { %919 = vmatmul.msk.f32.gmra.mxu0 %vm250_vm0, %v227_v5  ;;  %929 = vmatmul.msk.f32.gmra.mxu3 %vm250_vm0, %v237_v10 }
  0x24   : > { %953 = vmatpush.msrb.mxu3 %v391_v19  ;;  %956 = vmatpush.msra.mxu2 %v389_v21 }
  0x25   : > { %407 = vmatpush.msra.mxu1 %v388_v23 }
  0x26   : > { %955 = vmatpush.msrb.mxu3 %v390_v20  ;;  %958 = vmatpush.msra.mxu2 %v388_v23 }
  0x27   : > { %408 = vmatpush.msra.mxu1 %v387_v25 }
  0x28   : > { %957 = vmatpush.msrb.mxu3 %v389_v21  ;;  %960 = vmatpush.msra.mxu2 %v387_v25  ;;  %v1018_v21 = vld [vmem:[%s1505_s4] ss:$0 sm:$0xff] }
  0x29   : > { %409 = vmatpush.msra.mxu1 %v386_v26 }
  0x2a   : > { %959 = vmatpush.msrb.mxu3 %v388_v23  ;;  %962 = vmatpush.msra.mxu2 %v386_v26 }
  0x2b   : > { %920 = vmatmul.msk.f32.gmra.mxu0 %vm250_vm0, %v228_v6  ;;  %930 = vmatmul.msk.f32.gmra.mxu3 %vm250_vm0, %v238_v12 }
  0x2c   : > { %410 = vmatpush.msra.mxu1 %v385_v27  ;;  %961 = vmatpush.msrb.mxu3 %v387_v25 }
  0x2d   : > { %964 = vmatpush.msra.mxu2 %v385_v27 }
  0x2e   : > { %411 = vmatpush.msra.mxu1 %v384_v29  ;;  %963 = vmatpush.msrb.mxu3 %v386_v26 }
  0x2f   : > { %966 = vmatpush.msra.mxu2 %v384_v29 }
  0x30   : > { %412 = vmatpush.msra.mxu1 %v383_v31  ;;  %965 = vmatpush.msrb.mxu3 %v385_v27 }
  0x31   : > { %968 = vmatpush.msra.mxu2 %v383_v31 }
  0x32   : > { %967 = vmatpush.msrb.mxu3 %v384_v29  ;;  %413 = vmatpush.msra.mxu1 %v382_v33 }
  0x33   : > { %921 = vmatmul.msk.f32.gmra.mxu0 %vm250_vm0, %v229_v7  ;;  %931 = vmatmul.msk.f32.gmra.mxu3 %vm250_vm0, %v239_v18 }
  0x34   : > { %969 = vmatpush.msrb.mxu3 %v383_v31  ;;  %970 = vmatpush.msra.mxu2 %v382_v33 }
  0x35   : > { %414 = vmatpush.msra.mxu1 %v381_v34 }
  0x36   : > { %971 = vmatpush.msrb.mxu3 %v382_v33  ;;  %972 = vmatpush.msra.mxu2 %v381_v34 }
  0x37   : > { %415 = vmatpush.msra.mxu1 %v380_v35 }
  0x38   : > { %973 = vmatpush.msrb.mxu3 %v381_v34  ;;  %974 = vmatpush.msra.mxu2 %v380_v35 }
  0x3a   : > { %975 = vmatpush.msrb.mxu3 %v380_v35 }
  0x3b   : > { %922 = vmatmul.msk.f32.gmra.mxu0 %vm250_vm0, %v230_v9  ;;  %932 = vmatmul.msk.f32.gmra.mxu3 %vm250_vm0, %v240_v24 }
  0x43   : > { %923 = vmatmul.msk.f32.gmra.mxu0 %vm250_vm0, %v231_v11  ;;  %933 = vmatmul.msk.f32.gmra.mxu3 %vm250_vm0, %v241_v30 }
  0x4b   : > { %924 = vmatmul.msk.f32.gmra.mxu0 %vm250_vm0, %v232_v16 }
  0x53   : > { %925 = vmatmul.msk.f32.gmra.mxu0 %vm250_vm0, %v233_v22 }
  0x5b   : > { %926 = vmatmul.msk.f32.gmra.mxu0 %vm250_vm0, %v234_v28 }
  0x63   : > { %927 = vmatmul.msk.f32.gmra.mxu0 %vm250_vm0, %v235_v32 }
  0x98   : > { %v316_v37 = vpop.f32.mrf.mxu0 }
  0x99   : > { %v317_v38 = vadd.f32 %v1017_v36, %v316_v37 }
  0x9b   : > { %v364_v39 = vmax.f32 %v317_v38, 0.0 }
  0x9d   : > { %416 = vmatmul.f32.vlgmr.msra.gmra.mxu1 %v364_v39 }
  0x9e   : > { %v346_v50 = vpop.f32.mrf.mxu3 }
  0x9f   : > { %v347_v13 = vadd.f32 %v1017_v36, %v346_v50 }
  0xa0   : > { %v319_v40 = vpop.f32.mrf.mxu0 }
  0xa1   : > { %v320_v41 = vadd.f32 %v1017_v36, %v319_v40  ;;  %v374_v14 = vmax.f32 %v347_v13, 0.0 }
  0xa3   : > { %v365_v42 = vmax.f32 %v320_v41, 0.0 }
  0xa5   : > { %419 = vmatmul.f32.gmra.mxu1 %v365_v42 }
  0xa6   : > { %v349_v54 = vpop.f32.mrf.mxu3 }
  0xa7   : > { %v350_v15 = vadd.f32 %v1017_v36, %v349_v54 }
  0xa8   : > { %v322_v43 = vpop.f32.mrf.mxu0 }
  0xa9   : > { %v323_v44 = vadd.f32 %v1017_v36, %v322_v43  ;;  %v375_v16 = vmax.f32 %v350_v15, 0.0 }
  0xab   : > { %v366_v45 = vmax.f32 %v323_v44, 0.0 }
  0xad   : > { %422 = vmatmul.f32.gmra.mxu1 %v366_v45 }
  0xae   : > { %v352_v58 = vpop.f32.mrf.mxu3 }
  0xaf   : > { %v353_v17 = vadd.f32 %v1017_v36, %v352_v58 }
  0xb0   : > { %v325_v46 = vpop.f32.mrf.mxu0 }
  0xb1   : > { %v326_v47 = vadd.f32 %v1017_v36, %v325_v46  ;;  %v376_v18 = vmax.f32 %v353_v17, 0.0 }
  0xb3   : > { %v367_v48 = vmax.f32 %v326_v47, 0.0 }
  0xb5   : > { %425 = vmatmul.f32.gmra.mxu1 %v367_v48 }
  0xb6   : > { %v355_v62 = vpop.f32.mrf.mxu3 }
  0xb7   : > { %v356_v19 = vadd.f32 %v1017_v36, %v355_v62 }
  0xb8   : > { %v328_v49 = vpop.f32.mrf.mxu0 }
  0xb9   : > { %v329_v51 = vadd.f32 %v1017_v36, %v328_v49  ;;  %v377_v20 = vmax.f32 %v356_v19, 0.0 }
  0xbb   : > { %v368_v52 = vmax.f32 %v329_v51, 0.0 }
  0xbd   : > { %428 = vmatmul.f32.gmra.mxu1 %v368_v52 }
  0xbe   : > { %v358_v2 = vpop.f32.mrf.mxu3 }
  0xbf   : > { %v359_v4 = vadd.f32 %v1017_v36, %v358_v2 }
  0xc0   : > { %v331_v53 = vpop.f32.mrf.mxu0 }
  0xc1   : > { %v332_v55 = vadd.f32 %v1017_v36, %v331_v53  ;;  %v378_v6 = vmax.f32 %v359_v4, 0.0 }
  0xc3   : > { %v369_v56 = vmax.f32 %v332_v55, 0.0  ;;  %458 = vmatmul.f32.vlgmr.msrb.gmra.mxu3 %v378_v6 }
  0xc5   : > { %431 = vmatmul.f32.gmra.mxu1 %v369_v56 }
  0xc6   : > { %v361_v8 = vpop.f32.mrf.mxu3 }
  0xc7   : > { %v362_v10 = vadd.f32 %v1017_v36, %v361_v8 }
  0xc8   : > { %v334_v57 = vpop.f32.mrf.mxu0 }
  0xc9   : > { %v335_v59 = vadd.f32 %v1017_v36, %v334_v57  ;;  %v379_v12 = vmax.f32 %v362_v10, 0.0 }
  0xcb   : > { %v370_v60 = vmax.f32 %v335_v59, 0.0  ;;  %461 = vmatmul.f32.gmra.mxu3 %v379_v12 }
  0xcd   : > { %434 = vmatmul.f32.gmra.mxu1 %v370_v60 }
  0xd0   : > { %v337_v61 = vpop.f32.mrf.mxu0 }
  0xd1   : > { %v338_v63 = vadd.f32 %v1017_v36, %v337_v61 }
  0xd3   : > { %v371_v0 = vmax.f32 %v338_v63, 0.0 }
  0xd5   : > { %437 = vmatmul.f32.vlgmr.msra.gmra.mxu2 %v371_v0 }
  0xd8   : > { %v340_v1 = vpop.f32.mrf.mxu0 }
  0xd9   : > { %v341_v3 = vadd.f32 %v1017_v36, %v340_v1 }
  0xdb   : > { %v372_v5 = vmax.f32 %v341_v3, 0.0 }
  0xdd   : > { %440 = vmatmul.f32.gmra.mxu2 %v372_v5 }
  0xe0   : > { %v343_v7 = vpop.f32.mrf.mxu0 }
  0xe1   : > { %v344_v9 = vadd.f32 %v1017_v36, %v343_v7 }
  0xe3   : > { %v373_v11 = vmax.f32 %v344_v9, 0.0 }
  0xe5   : > { %443 = vmatmul.f32.gmra.mxu2 %v373_v11 }
  0xed   : > { %446 = vmatmul.f32.gmra.mxu2 %v374_v14 }
  0xf5   : > { %449 = vmatmul.f32.gmra.mxu2 %v375_v16 }
  0xfd   : > { %452 = vmatmul.f32.gmra.mxu2 %v376_v18 }
 0x105   : > { %455 = vmatmul.f32.gmra.mxu2 %v377_v20 }
 0x11a   : > { %v417_v22 = vpop.f32.mrf.mxu1 }
 0x11b   : > { %v418_v23 = vadd.f32 %v1018_v21, %v417_v22 }
 0x11d   : > { %465 = vmax.xlane.f32.xlu0 %v418_v23 }
 0x122   : > { %v420_v24 = vpop.f32.mrf.mxu1 }
 0x123   : > { %v421_v25 = vadd.f32 %v1018_v21, %v420_v24 }
 0x125   : > { %467 = vmax.xlane.f32.xlu0 %v421_v25 }
 0x12a   : > { %v423_v26 = vpop.f32.mrf.mxu1 }
 0x12b   : > { %v424_v27 = vadd.f32 %v1018_v21, %v423_v26 }
 0x12d   : > { %469 = vmax.xlane.f32.xlu1 %v424_v27 }
 0x132   : > { %v426_v28 = vpop.f32.mrf.mxu1 }
 0x133   : > { %v427_v29 = vadd.f32 %v1018_v21, %v426_v28 }
 0x135   : > { %471 = vmax.xlane.f32.xlu1 %v427_v29 }
 0x13a   : > { %v429_v30 = vpop.f32.mrf.mxu1 }
 0x13b   : > { %v430_v31 = vadd.f32 %v1018_v21, %v429_v30 }
 0x13d   : > { %473 = vmax.xlane.f32.xlu2 %v430_v31 }
 0x142   : > { %v432_v32 = vpop.f32.mrf.mxu1 }
 0x143   : > { %v1331_v33 = vadd.f32 %v1018_v21, %v432_v32 }
 0x145   : > { %475 = vmax.xlane.f32.xlu2 %v1331_v33 }
 0x146   : > { %v459_v46 = vpop.f32.mrf.mxu3 }
 0x147   : > { %v1352_v47 = vadd.f32 %v1018_v21, %v459_v46 }
 0x14a   : > { %v435_v34 = vpop.f32.mrf.mxu1 }
 0x14b   : > { %v1334_v35 = vadd.f32 %v1018_v21, %v435_v34 }
 0x14d   : > { %477 = vmax.xlane.f32.xlu0 %v1334_v35 }
 0x14e   : > { %v462_v50 = vpop.f32.mrf.mxu3 }
 0x14f   : > { %v1358_v51 = vadd.f32 %v1018_v21, %v462_v50 }
 0x158   : > { %v438_v36 = vpop.f32.mrf.mxu2 }
 0x159   : > { %v1337_v37 = vadd.f32 %v1018_v21, %v438_v36 }
 0x15b   : > { %479 = vmax.xlane.f32.xlu1 %v1337_v37 }
 0x160   : > { %v441_v38 = vpop.f32.mrf.mxu2 }
 0x161   : > { %v1340_v39 = vadd.f32 %v1018_v21, %v441_v38 }
 0x163   : > { %481 = vmax.xlane.f32.xlu2 %v1340_v39 }
 0x168   : > { %v444_v40 = vpop.f32.mrf.mxu2 }
 0x169   : > { %v1343_v41 = vadd.f32 %v1018_v21, %v444_v40 }
 0x16b   : > { %483 = vmax.xlane.f32.xlu0 %v1343_v41 }
 0x170   : > { %v447_v42 = vpop.f32.mrf.mxu2 }
 0x171   : > { %v1346_v43 = vadd.f32 %v1018_v21, %v447_v42 }
 0x173   : > { %485 = vmax.xlane.f32.xlu1 %v1346_v43 }
 0x178   : > { %v450_v44 = vpop.f32.mrf.mxu2 }
 0x179   : > { %v1349_v45 = vadd.f32 %v1018_v21, %v450_v44 }
 0x17b   : > { %487 = vmax.xlane.f32.xlu2 %v1349_v45 }
 0x180   : > { %v453_v48 = vpop.f32.mrf.mxu2 }
 0x181   : > { %v1354_v49 = vadd.f32 %v1018_v21, %v453_v48 }
 0x183   : > { %493 = vmax.xlane.f32.xlu2 %v1352_v47  ;;  %489 = vmax.xlane.f32.xlu0 %v1354_v49 }
 0x188   : > { %v456_v52 = vpop.f32.mrf.mxu2 }
 0x189   : > { %v1360_v53 = vadd.f32 %v1018_v21, %v456_v52 }
 0x18b   : > { %491 = vmax.xlane.f32.xlu1 %v1360_v53  ;;  %495 = vmax.xlane.f32.xlu0 %v1358_v51 }
 0x190   : > { %v466_v54 = vpop.xlane.xlu0 %465 }
 0x191   : > { %v497_v55 = vsub.f32 %v418_v23, %v466_v54 }
 0x193   : > { %v513_v56 = vmul.f32 1.442695, %v497_v55 }
 0x195   : > { %1019 = vpow2.f32 %v513_v56 }
 0x198   : > { %v468_v57 = vpop.xlane.xlu0 %467 }
 0x199   : > { %v498_v58 = vsub.f32 %v421_v25, %v468_v57 }
 0x19b   : > { %v1364_v59 = vpop.eup %1019  ;;  %v515_v60 = vmul.f32 1.442695, %v498_v58 }
 0x19c   : > { %545 = vadd.xlane.f32.xlu1 %v1364_v59 }
 0x19d   : > { %1021 = vpow2.f32 %v515_v60 }
 0x1a0   : > { %v470_v61 = vpop.xlane.xlu1 %469 }
 0x1a1   : > { %v499_v62 = vsub.f32 %v424_v27, %v470_v61 }
 0x1a3   : > { %v1367_v63 = vpop.eup %1021  ;;  %v517_v0 = vmul.f32 1.442695, %v499_v62 }
 0x1a4   : > { %547 = vadd.xlane.f32.xlu2 %v1367_v63 }
 0x1a5   : > { %1023 = vpow2.f32 %v517_v0 }
 0x1a8   : > { %v472_v1 = vpop.xlane.xlu1 %471 }
 0x1a9   : > { %v500_v2 = vsub.f32 %v427_v29, %v472_v1 }
 0x1ab   : > { %v1370_v3 = vpop.eup %1023  ;;  %v519_v4 = vmul.f32 1.442695, %v500_v2 }
 0x1ac   : > { %549 = vadd.xlane.f32.xlu0 %v1370_v3 }
 0x1ad   : > { %1025 = vpow2.f32 %v519_v4 }
 0x1b0   : > { %v474_v5 = vpop.xlane.xlu2 %473 }
 0x1b1   : > { %v501_v6 = vsub.f32 %v430_v31, %v474_v5 }
 0x1b3   : > { %v1373_v7 = vpop.eup %1025  ;;  %v521_v8 = vmul.f32 1.442695, %v501_v6 }
 0x1b4   : > { %551 = vadd.xlane.f32.xlu1 %v1373_v7 }
 0x1b5   : > { %1027 = vpow2.f32 %v521_v8 }
 0x1b8   : > { %v476_v9 = vpop.xlane.xlu2 %475 }
 0x1b9   : > { %v502_v10 = vsub.f32 %v1331_v33, %v476_v9 }
 0x1bb   : > { %v1377_v11 = vpop.eup %1027  ;;  %v523_v12 = vmul.f32 1.442695, %v502_v10 }
 0x1bc   : > { %553 = vadd.xlane.f32.xlu2 %v1377_v11 }
 0x1bd   : > { %1029 = vpow2.f32 %v523_v12 }
 0x1c0   : > { %v478_v13 = vpop.xlane.xlu0 %477 }
 0x1c1   : > { %v503_v14 = vsub.f32 %v1334_v35, %v478_v13 }
 0x1c3   : > { %v1381_v15 = vpop.eup %1029  ;;  %v525_v16 = vmul.f32 1.442695, %v503_v14 }
 0x1c4   : > { %555 = vadd.xlane.f32.xlu0 %v1381_v15 }
 0x1c5   : > { %1031 = vpow2.f32 %v525_v16 }
 0x1cb   : > { %v1384_v17 = vpop.eup %1031 }
 0x1cc   : > { %557 = vadd.xlane.f32.xlu1 %v1384_v17 }
 0x1ce   : > { %v480_v18 = vpop.xlane.xlu1 %479 }
 0x1cf   : > { %v504_v19 = vsub.f32 %v1337_v37, %v480_v18 }
 0x1d1   : > { %v527_v20 = vmul.f32 1.442695, %v504_v19 }
 0x1d3   : > { %1033 = vpow2.f32 %v527_v20 }
 0x1d6   : > { %v482_v21 = vpop.xlane.xlu2 %481 }
 0x1d7   : > { %v505_v22 = vsub.f32 %v1340_v39, %v482_v21 }
 0x1d9   : > { %v1389_v23 = vpop.eup %1033  ;;  %v529_v24 = vmul.f32 1.442695, %v505_v22 }
 0x1da   : > { %559 = vadd.xlane.f32.xlu2 %v1389_v23 }
 0x1db   : > { %1035 = vpow2.f32 %v529_v24 }
 0x1de   : > { %v484_v25 = vpop.xlane.xlu0 %483 }
 0x1df   : > { %v506_v26 = vsub.f32 %v1343_v41, %v484_v25 }
 0x1e1   : > { %v1393_v27 = vpop.eup %1035  ;;  %v531_v28 = vmul.f32 1.442695, %v506_v26 }
 0x1e2   : > { %561 = vadd.xlane.f32.xlu0 %v1393_v27 }
 0x1e3   : > { %1037 = vpow2.f32 %v531_v28 }
 0x1e6   : > { %v486_v29 = vpop.xlane.xlu1 %485 }
 0x1e7   : > { %v507_v30 = vsub.f32 %v1346_v43, %v486_v29 }
 0x1e9   : > { %v1397_v31 = vpop.eup %1037  ;;  %v533_v32 = vmul.f32 1.442695, %v507_v30 }
 0x1ea   : > { %563 = vadd.xlane.f32.xlu1 %v1397_v31 }
 0x1eb   : > { %1039 = vpow2.f32 %v533_v32 }
 0x1ee   : > { %v488_v33 = vpop.xlane.xlu2 %487 }
 0x1ef   : > { %v508_v34 = vsub.f32 %v1349_v45, %v488_v33 }
 0x1f1   : > { %v1401_v35 = vpop.eup %1039  ;;  %v535_v36 = vmul.f32 1.442695, %v508_v34 }
 0x1f2   : > { %565 = vadd.xlane.f32.xlu2 %v1401_v35 }
 0x1f3   : > { %1041 = vpow2.f32 %v535_v36 }
 0x1f6   : > { %v494_v37 = vpop.xlane.xlu2 %493  ;;  %v490_v38 = vpop.xlane.xlu0 %489 }
 0x1f7   : > { %v511_v39 = vsub.f32 %v1352_v47, %v494_v37  ;;  %v509_v40 = vsub.f32 %v1354_v49, %v490_v38 }
 0x1f9   : > { %v1406_v41 = vpop.eup %1041  ;;  %v541_v42 = vmul.f32 1.442695, %v511_v39  ;;  %v537_v43 = vmul.f32 1.442695, %v509_v40 }
 0x1fa   : > { %567 = vadd.xlane.f32.xlu0 %v1406_v41 }
 0x1fb   : > { %1043 = vpow2.f32 %v541_v42 }
 0x1fc   : > { %1045 = vpow2.f32 %v537_v43 }
 0x1fe   : > { %v492_v44 = vpop.xlane.xlu1 %491  ;;  %v496_v45 = vpop.xlane.xlu0 %495 }
 0x1ff   : > { %v510_v46 = vsub.f32 %v1360_v53, %v492_v44  ;;  %v512_v48 = vsub.f32 %v1358_v51, %v496_v45 }
 0x201   : > { %v1411_v50 = vpop.eup %1043  ;;  %v539_v52 = vmul.f32 1.442695, %v510_v46  ;;  %v543_v47 = vmul.f32 1.442695, %v512_v48 }
 0x202   : > { %v1413_v54 = vpop.eup %1045  ;;  %573 = vadd.xlane.f32.xlu0 %v1411_v50 }
 0x203   : > { %1047 = vpow2.f32 %v539_v52  ;;  %569 = vadd.xlane.f32.xlu1 %v1413_v54 }
 0x204   : > { %1049 = vpow2.f32 %v543_v47 }
 0x209   : > { %v1417_v49 = vpop.eup %1047 }
 0x20a   : > { %v1419_v55 = vpop.eup %1049  ;;  %571 = vadd.xlane.f32.xlu2 %v1417_v49 }
 0x20b   : > { %575 = vadd.xlane.f32.xlu1 %v1419_v55 }
 0x20f   : > { %v546_v51 = vpop.xlane.xlu1 %545 }
 0x210   : > { %1051 = vrcp.f32 %v546_v51  ;;  %v588_v60 = vand.u32 2147483648, %v546_v51  ;;  %v586_v62 = vand.u32 2147483647, %v546_v51  ;;  %vm582_vm2 = vweird.f32 %v546_v51 }
 0x212   : > { %v589_v2 = vor.u32 1.1754944e-38, %v588_v60  ;;  %vm587_vm4 = vcmp.eq.f32.partialorder %v586_v62, 8.507059e+37 }
 0x216   : > { %v1052_v53 = vpop.eup %1051 }
 0x217   : > { %v578_v56 = vmul.f32 %v1052_v53, %v546_v51  ;;  %v548_v57 = vpop.xlane.xlu2 %547  ;;  %vm583_vm1 = vweird.f32 %v1052_v53 }
 0x218   : > { %1053 = vrcp.f32 %v548_v57  ;;  %vm584_vm3 = vmor %vm582_vm2, %vm583_vm1  ;;  %v603_v12 = vand.u32 2147483648, %v548_v57  ;;  %v601_v14 = vand.u32 2147483647, %v548_v57  ;;  %vm597_vm6 = vweird.f32 %v548_v57 }
 0x219   : > { %v579_v58 = vsub.f32 1.0, %v578_v56 }
 0x21a   : > { %v604_v19 = vor.u32 1.1754944e-38, %v603_v12  ;;  %vm602_vm8 = vcmp.eq.f32.partialorder %v601_v14, 8.507059e+37 }
 0x21b   : > { %v580_v61 = vmul.f32 %v1052_v53, %v579_v58 }
 0x21d   : > { %v581_v0 = vadd.f32 %v1052_v53, %v580_v61 }
 0x21e   : > { %v1054_v1 = vpop.eup %1053 }
 0x21f   : > { %v585_v4 = vsel %vm584_vm3, %v1052_v53, %v581_v0  ;;  %v593_v5 = vmul.f32 %v1054_v1, %v548_v57  ;;  %v550_v6 = vpop.xlane.xlu0 %549  ;;  %vm598_vm5 = vweird.f32 %v1054_v1 }
 0x220   : > { %v590_v8 = vsel %vm587_vm4, %v589_v2, %v585_v4  ;;  %1055 = vrcp.f32 %v550_v6  ;;  %vm599_vm7 = vmor %vm597_vm6, %vm598_vm5  ;;  %v618_v26 = vand.u32 2147483648, %v550_v6  ;;  %v616_v29 = vand.u32 2147483647, %v550_v6 }
 0x221   : > { %v591_v9 = vmul.f32 %v1364_v59, %v590_v8  ;;  %v594_v10 = vsub.f32 1.0, %v593_v5  ;;  %vm612_vm10 = vweird.f32 %v550_v6 }
 0x222   : > { %v619_v33 = vor.u32 1.1754944e-38, %v618_v26  ;;  %vm617_vm12 = vcmp.eq.f32.partialorder %v616_v29, 8.507059e+37 }
 0x223   : > { %817 = vst [vmem:[%s1427_s9] sm:$0xff] %v591_v9  ;;  %v595_v13 = vmul.f32 %v1054_v1, %v594_v10 }
 0x225   : > { %v596_v16 = vadd.f32 %v1054_v1, %v595_v13 }
 0x226   : > { %v1056_v18 = vpop.eup %1055 }
 0x227   : > { %v600_v20 = vsel %vm599_vm7, %v1054_v1, %v596_v16  ;;  %v608_v21 = vmul.f32 %v1056_v18, %v550_v6  ;;  %v552_v22 = vpop.xlane.xlu1 %551  ;;  %vm613_vm9 = vweird.f32 %v1056_v18 }
 0x228   : > { %v605_v59 = vsel %vm602_vm8, %v604_v19, %v600_v20  ;;  %1057 = vrcp.f32 %v552_v22  ;;  %vm614_vm11 = vmor %vm612_vm10, %vm613_vm9  ;;  %v633_v40 = vand.u32 2147483648, %v552_v22  ;;  %v631_v43 = vand.u32 2147483647, %v552_v22 }
 0x229   : > { %v606_v24 = vmul.f32 %v1367_v63, %v605_v59  ;;  %v609_v25 = vsub.f32 1.0, %v608_v21  ;;  %vm627_vm14 = vweird.f32 %v552_v22 }
 0x22a   : > { %v634_v46 = vor.u32 1.1754944e-38, %v633_v40  ;;  %vm632_vm0 = vcmp.eq.f32.partialorder %v631_v43, 8.507059e+37 }
 0x22b   : > { %818 = vst [vmem:[%s1427_s9 + $0x8] sm:$0xff] %v606_v24  ;;  %v610_v28 = vmul.f32 %v1056_v18, %v609_v25 }
 0x22d   : > { %v611_v30 = vadd.f32 %v1056_v18, %v610_v28 }
 0x22e   : > { %v1058_v32 = vpop.eup %1057 }
 0x22f   : > { %v615_v34 = vsel %vm614_vm11, %v1056_v18, %v611_v30  ;;  %v623_v36 = vmul.f32 %v1058_v32, %v552_v22  ;;  %v554_v37 = vpop.xlane.xlu2 %553  ;;  %vm628_vm13 = vweird.f32 %v1058_v32 }
 0x230   : > { %v620_v38 = vsel %vm617_vm12, %v619_v33, %v615_v34  ;;  %1059 = vrcp.f32 %v554_v37  ;;  %vm629_vm15 = vmor %vm627_vm14, %vm628_vm13  ;;  %v648_v56 = vand.u32 2147483648, %v554_v37  ;;  %v646_v58 = vand.u32 2147483647, %v554_v37 }
 0x231   : > { %v621_v63 = vmul.f32 %v1370_v3, %v620_v38  ;;  %v624_v39 = vsub.f32 1.0, %v623_v36  ;;  %vm642_vm2 = vweird.f32 %v554_v37 }
 0x232   : > { %v649_v62 = vor.u32 1.1754944e-38, %v648_v56  ;;  %vm647_vm4 = vcmp.eq.f32.partialorder %v646_v58, 8.507059e+37 }
 0x233   : > { %819 = vst [vmem:[%s1427_s9 + $0x10] sm:$0xff] %v621_v63  ;;  %v625_v42 = vmul.f32 %v1058_v32, %v624_v39 }
 0x235   : > { %v626_v44 = vadd.f32 %v1058_v32, %v625_v42 }
 0x236   : > { %v1060_v45 = vpop.eup %1059 }
 0x237   : > { %v630_v48 = vsel %vm629_vm15, %v1058_v32, %v626_v44  ;;  %v638_v52 = vmul.f32 %v1060_v45, %v554_v37  ;;  %v556_v47 = vpop.xlane.xlu0 %555  ;;  %vm643_vm1 = vweird.f32 %v1060_v45 }
 0x238   : > { %v635_v51 = vsel %vm632_vm0, %v634_v46, %v630_v48  ;;  %1061 = vrcp.f32 %v556_v47  ;;  %vm644_vm3 = vmor %vm642_vm2, %vm643_vm1  ;;  %v663_v6 = vand.u32 2147483648, %v556_v47  ;;  %v661_v9 = vand.u32 2147483647, %v556_v47 }
 0x239   : > { %v636_v3 = vmul.f32 %v1373_v7, %v635_v51  ;;  %v639_v53 = vsub.f32 1.0, %v638_v52  ;;  %vm657_vm6 = vweird.f32 %v556_v47 }
 0x23a   : > { %v664_v13 = vor.u32 1.1754944e-38, %v663_v6  ;;  %vm662_vm8 = vcmp.eq.f32.partialorder %v661_v9, 8.507059e+37 }
 0x23b   : > { %820 = vst [vmem:[%s1427_s9 + $0x18] sm:$0xff] %v636_v3  ;;  %v640_v57 = vmul.f32 %v1060_v45, %v639_v53 }
 0x23d   : > { %v641_v60 = vadd.f32 %v1060_v45, %v640_v57 }
 0x23e   : > { %v1062_v61 = vpop.eup %1061 }
 0x23f   : > { %v645_v0 = vsel %vm644_vm3, %v1060_v45, %v641_v60  ;;  %v653_v1 = vmul.f32 %v1062_v61, %v556_v47  ;;  %v558_v2 = vpop.xlane.xlu1 %557  ;;  %vm658_vm5 = vweird.f32 %v1062_v61 }
 0x240   : > { %v650_v4 = vsel %vm647_vm4, %v649_v62, %v645_v0  ;;  %1063 = vrcp.f32 %v558_v2  ;;  %vm659_vm7 = vmor %vm657_vm6, %vm658_vm5  ;;  %v676_v22 = vand.u32 2147483647, %v558_v2  ;;  %vm672_vm10 = vweird.f32 %v558_v2 }
 0x241   : > { %v651_v7 = vmul.f32 %v1377_v11, %v650_v4  ;;  %v654_v5 = vsub.f32 1.0, %v653_v1  ;;  %v678_v11 = vand.u32 2147483648, %v558_v2 }
 0x242   : > { %vm677_vm12 = vcmp.eq.f32.partialorder %v676_v22, 8.507059e+37 }
 0x243   : > { %821 = vst [vmem:[%s1427_s9 + $0x20] sm:$0xff] %v651_v7  ;;  %v655_v8 = vmul.f32 %v1062_v61, %v654_v5  ;;  %v679_v25 = vor.u32 1.1754944e-38, %v678_v11 }
 0x245   : > { %v656_v10 = vadd.f32 %v1062_v61, %v655_v8 }
 0x246   : > { %v1064_v12 = vpop.eup %1063 }
 0x247   : > { %v660_v14 = vsel %vm659_vm7, %v1062_v61, %v656_v10  ;;  %v668_v16 = vmul.f32 %v1064_v12, %v558_v2  ;;  %vm673_vm9 = vweird.f32 %v1064_v12 }
 0x248   : > { %v665_v18 = vsel %vm662_vm8, %v664_v13, %v660_v14  ;;  %vm674_vm11 = vmor %vm672_vm10, %vm673_vm9 }
 0x249   : > { %v666_v19 = vmul.f32 %v1381_v15, %v665_v18  ;;  %v669_v20 = vsub.f32 1.0, %v668_v16 }
 0x24b   : > { %822 = vst [vmem:[%s1427_s9 + $0x28] sm:$0xff] %v666_v19  ;;  %v670_v21 = vmul.f32 %v1064_v12, %v669_v20 }
 0x24d   : > { %v671_v59 = vadd.f32 %v1064_v12, %v670_v21  ;;  %v560_v24 = vpop.xlane.xlu2 %559 }
 0x24e   : > { %1065 = vrcp.f32 %v560_v24  ;;  %v693_v34 = vand.u32 2147483648, %v560_v24  ;;  %v691_v37 = vand.u32 2147483647, %v560_v24  ;;  %vm687_vm14 = vweird.f32 %v560_v24 }
 0x24f   : > { %v675_v26 = vsel %vm674_vm11, %v1064_v12, %v671_v59 }
 0x250   : > { %v680_v28 = vsel %vm677_vm12, %v679_v25, %v675_v26  ;;  %v694_v39 = vor.u32 1.1754944e-38, %v693_v34  ;;  %vm692_vm0 = vcmp.eq.f32.partialorder %v691_v37, 8.507059e+37 }
 0x251   : > { %v681_v29 = vmul.f32 %v1384_v17, %v680_v28 }
 0x253   : > { %823 = vst [vmem:[%s1427_s9 + $0x30] sm:$0xff] %v681_v29 }
 0x254   : > { %v1066_v15 = vpop.eup %1065 }
 0x255   : > { %v683_v30 = vmul.f32 %v1066_v15, %v560_v24  ;;  %v562_v32 = vpop.xlane.xlu0 %561  ;;  %vm688_vm13 = vweird.f32 %v1066_v15 }
 0x256   : > { %1067 = vrcp.f32 %v562_v32  ;;  %vm689_vm15 = vmor %vm687_vm14, %vm688_vm13  ;;  %v708_v46 = vand.u32 2147483648, %v562_v32  ;;  %v706_v52 = vand.u32 2147483647, %v562_v32  ;;  %vm702_vm2 = vweird.f32 %v562_v32 }
 0x257   : > { %v684_v33 = vsub.f32 1.0, %v683_v30 }
 0x258   : > { %v709_v3 = vor.u32 1.1754944e-38, %v708_v46  ;;  %vm707_vm4 = vcmp.eq.f32.partialorder %v706_v52, 8.507059e+37 }
 0x259   : > { %v685_v36 = vmul.f32 %v1066_v15, %v684_v33 }
 0x25b   : > { %v686_v38 = vadd.f32 %v1066_v15, %v685_v36 }
 0x25c   : > { %v1068_v63 = vpop.eup %1067 }
 0x25d   : > { %v690_v40 = vsel %vm689_vm15, %v1066_v15, %v686_v38  ;;  %v698_v42 = vmul.f32 %v1068_v63, %v562_v32  ;;  %v564_v17 = vpop.xlane.xlu1 %563  ;;  %vm703_vm1 = vweird.f32 %v1068_v63 }
 0x25e   : > { %v695_v43 = vsel %vm692_vm0, %v694_v39, %v690_v40  ;;  %1069 = vrcp.f32 %v564_v17  ;;  %vm704_vm3 = vmor %vm702_vm2, %vm703_vm1  ;;  %v723_v61 = vand.u32 2147483648, %v564_v17  ;;  %v721_v0 = vand.u32 2147483647, %v564_v17 }
 0x25f   : > { %v696_v44 = vmul.f32 %v1389_v23, %v695_v43  ;;  %v699_v45 = vsub.f32 1.0, %v698_v42  ;;  %vm717_vm6 = vweird.f32 %v564_v17 }
 0x260   : > { %v724_v4 = vor.u32 1.1754944e-38, %v723_v61  ;;  %vm722_vm8 = vcmp.eq.f32.partialorder %v721_v0, 8.507059e+37 }
 0x261   : > { %824 = vst [vmem:[%s1427_s9 + $0x38] sm:$0xff] %v696_v44  ;;  %v700_v48 = vmul.f32 %v1068_v63, %v699_v45 }
 0x263   : > { %v701_v47 = vadd.f32 %v1068_v63, %v700_v48 }
 0x264   : > { %v1070_v51 = vpop.eup %1069 }
 0x265   : > { %v705_v53 = vsel %vm704_vm3, %v1068_v63, %v701_v47  ;;  %v713_v56 = vmul.f32 %v1070_v51, %v564_v17  ;;  %v566_v57 = vpop.xlane.xlu2 %565  ;;  %vm718_vm5 = vweird.f32 %v1070_v51 }
 0x266   : > { %v710_v58 = vsel %vm707_vm4, %v709_v3, %v705_v53  ;;  %1071 = vrcp.f32 %v566_v57  ;;  %vm719_vm7 = vmor %vm717_vm6, %vm718_vm5  ;;  %v738_v10 = vand.u32 2147483648, %v566_v57  ;;  %v736_v13 = vand.u32 2147483647, %v566_v57 }
 0x267   : > { %v711_v23 = vmul.f32 %v1393_v27, %v710_v58  ;;  %v714_v60 = vsub.f32 1.0, %v713_v56  ;;  %vm732_vm10 = vweird.f32 %v566_v57 }
 0x268   : > { %v739_v18 = vor.u32 1.1754944e-38, %v738_v10  ;;  %vm737_vm12 = vcmp.eq.f32.partialorder %v736_v13, 8.507059e+37 }
 0x269   : > { %825 = vst [vmem:[%s1427_s9 + $0x40] sm:$0xff] %v711_v23  ;;  %v715_v62 = vmul.f32 %v1070_v51, %v714_v60 }
 0x26b   : > { %v716_v1 = vadd.f32 %v1070_v51, %v715_v62 }
 0x26c   : > { %v1072_v2 = vpop.eup %1071 }
 0x26d   : > { %v720_v7 = vsel %vm719_vm7, %v1070_v51, %v716_v1  ;;  %v728_v5 = vmul.f32 %v1072_v2, %v566_v57  ;;  %v568_v6 = vpop.xlane.xlu0 %567  ;;  %vm733_vm9 = vweird.f32 %v1072_v2 }
 0x26e   : > { %v725_v8 = vsel %vm722_vm8, %v724_v4, %v720_v7  ;;  %1073 = vrcp.f32 %v568_v6  ;;  %vm734_vm11 = vmor %vm732_vm10, %vm733_vm9  ;;  %v753_v24 = vand.u32 2147483648, %v568_v6  ;;  %v751_v26 = vand.u32 2147483647, %v568_v6 }
 0x26f   : > { %v726_v27 = vmul.f32 %v1397_v31, %v725_v8  ;;  %v729_v9 = vsub.f32 1.0, %v728_v5  ;;  %vm747_vm14 = vweird.f32 %v568_v6 }
 0x270   : > { %v754_v15 = vor.u32 1.1754944e-38, %v753_v24  ;;  %vm752_vm0 = vcmp.eq.f32.partialorder %v751_v26, 8.507059e+37 }
 0x271   : > { %826 = vst [vmem:[%s1427_s9 + $0x48] sm:$0xff] %v726_v27  ;;  %v730_v12 = vmul.f32 %v1072_v2, %v729_v9 }
 0x273   : > { %v731_v14 = vadd.f32 %v1072_v2, %v730_v12 }
 0x274   : > { %v1074_v16 = vpop.eup %1073 }
 0x275   : > { %v735_v19 = vsel %vm734_vm11, %v1072_v2, %v731_v14  ;;  %v743_v20 = vmul.f32 %v1074_v16, %v568_v6  ;;  %v574_v11 = vpop.xlane.xlu0 %573  ;;  %vm748_vm13 = vweird.f32 %v1074_v16 }
 0x276   : > { %v740_v21 = vsel %vm737_vm12, %v739_v18, %v735_v19  ;;  %v570_v22 = vpop.xlane.xlu1 %569  ;;  %1075 = vrcp.f32 %v574_v11  ;;  %vm749_vm15 = vmor %vm747_vm14, %vm748_vm13  ;;  %v798_v40 = vand.u32 2147483648, %v574_v11  ;;  %v796_v43 = vand.u32 2147483647, %v574_v11 }
 0x277   : > { %v741_v31 = vmul.f32 %v1401_v35, %v740_v21  ;;  %v744_v59 = vsub.f32 1.0, %v743_v20  ;;  %1077 = vrcp.f32 %v570_v22  ;;  %v768_v42 = vand.u32 2147483648, %v570_v22 }
 0x278   : > { %v766_v45 = vand.u32 2147483647, %v570_v22  ;;  %vm792_vm3 = vweird.f32 %v574_v11  ;;  %vm762_vm4 = vweird.f32 %v570_v22  ;;  %vm797_vm7 = vcmp.eq.f32.partialorder %v796_v43, 8.507059e+37 }
 0x279   : > { %827 = vst [vmem:[%s1427_s9 + $0x50] sm:$0xff] %v741_v31  ;;  %v745_v25 = vmul.f32 %v1074_v16, %v744_v59  ;;  %v769_v47 = vor.u32 1.1754944e-38, %v768_v42 }
 0x27a   : > { %vm767_vm8 = vcmp.eq.f32.partialorder %v766_v45, 8.507059e+37 }
 0x27b   : > { %v746_v28 = vadd.f32 %v1074_v16, %v745_v25 }
 0x27c   : > { %v1076_v29 = vpop.eup %1075 }
 0x27d   : > { %v1078_v30 = vpop.eup %1077  ;;  %v750_v32 = vsel %vm749_vm15, %v1074_v16, %v746_v28  ;;  %v788_v33 = vmul.f32 %v1076_v29, %v574_v11  ;;  %v572_v34 = vpop.xlane.xlu2 %571  ;;  %vm793_vm1 = vweird.f32 %v1076_v29 }
 0x27e   : > { %v755_v36 = vsel %vm752_vm0, %v754_v15, %v750_v32  ;;  %v758_v35 = vmul.f32 %v1078_v30, %v570_v22  ;;  %1079 = vrcp.f32 %v572_v34  ;;  %v1450_v37 = vpop.xlane.xlu1 %575  ;;  %vm763_vm2 = vweird.f32 %v1078_v30  ;;  %vm794_vm5 = vmor %vm792_vm3, %vm793_vm1 }
 0x27f   : > { %v756_v38 = vmul.f32 %v1406_v41, %v755_v36  ;;  %v789_v63 = vsub.f32 1.0, %v788_v33  ;;  %1081 = vrcp.f32 %v1450_v37  ;;  %v799_v41 = vor.u32 1.1754944e-38, %v798_v40  ;;  %vm764_vm6 = vmor %vm762_vm4, %vm763_vm2 }
 0x280   : > { %v759_v39 = vsub.f32 1.0, %v758_v35  ;;  %v783_v0 = vand.u32 2147483648, %v572_v34  ;;  %v781_v2 = vand.u32 2147483647, %v572_v34  ;;  %vm777_vm10 = vweird.f32 %v572_v34 }
 0x281   : > { %828 = vst [vmem:[%s1427_s9 + $0x58] sm:$0xff] %v756_v38  ;;  %v790_v17 = vmul.f32 %v1076_v29, %v789_v63  ;;  %v813_v7 = vand.u32 2147483648, %v1450_v37  ;;  %vm807_vm14 = vweird.f32 %v1450_v37 }
 0x282   : > { %v760_v44 = vmul.f32 %v1078_v30, %v759_v39  ;;  %v784_v6 = vor.u32 1.1754944e-38, %v783_v0  ;;  %vm782_vm13 = vcmp.eq.f32.partialorder %v781_v2, 8.507059e+37 }
 0x283   : > { %v791_v46 = vadd.f32 %v1076_v29, %v790_v17  ;;  %v814_v10 = vor.u32 1.1754944e-38, %v813_v7 }
 0x284   : > { %v1080_v48 = vpop.eup %1079  ;;  %v761_v52 = vadd.f32 %v1078_v30, %v760_v44 }
 0x285   : > { %v795_v51 = vsel %vm794_vm5, %v1076_v29, %v791_v46  ;;  %v773_v3 = vmul.f32 %v1080_v48, %v572_v34  ;;  %v1082_v53 = vpop.eup %1081  ;;  %vm778_vm9 = vweird.f32 %v1080_v48 }
 0x286   : > { %v765_v56 = vsel %vm764_vm6, %v1078_v30, %v761_v52  ;;  %v800_v57 = vsel %vm797_vm7, %v799_v41, %v795_v51  ;;  %v803_v61 = vmul.f32 %v1082_v53, %v1450_v37  ;;  %vm808_vm11 = vweird.f32 %v1082_v53  ;;  %vm779_vm12 = vmor %vm777_vm10, %vm778_vm9 }
 0x287   : > { %v770_v58 = vsel %vm767_vm8, %v769_v47, %v765_v56  ;;  %v801_v23 = vmul.f32 %v1411_v50, %v800_v57  ;;  %v774_v60 = vsub.f32 1.0, %v773_v3  ;;  %vm809_vm15 = vmor %vm807_vm14, %vm808_vm11 }
 0x288   : > { %v771_v62 = vmul.f32 %v1413_v54, %v770_v58  ;;  %v804_v4 = vsub.f32 1.0, %v803_v61  ;;  %v811_v54 = vand.u32 2147483647, %v1450_v37 }
 0x289   : > { %831 = vst [vmem:[%s1427_s9 + $0x70] sm:$0xff] %v801_v23  ;;  %v775_v1 = vmul.f32 %v1080_v48, %v774_v60 }
 0x28a   : > { %829 = vst [vmem:[%s1427_s9 + $0x60] sm:$0xff] %v771_v62  ;;  %v805_v5 = vmul.f32 %v1082_v53, %v804_v4  ;;  %vm812_vm0 = vcmp.eq.f32.partialorder %v811_v54, 8.507059e+37 }
 0x28b   : > { %v776_v50 = vadd.f32 %v1080_v48, %v775_v1 }
 0x28c   : > { %v806_v27 = vadd.f32 %v1082_v53, %v805_v5 }
 0x28d   : > { %v780_v8 = vsel %vm779_vm12, %v1080_v48, %v776_v50 }
 0x28e   : > { %v785_v9 = vsel %vm782_vm13, %v784_v6, %v780_v8  ;;  %v810_v13 = vsel %vm809_vm15, %v1082_v53, %v806_v27 }
 0x28f   : > { %v786_v12 = vmul.f32 %v1417_v49, %v785_v9  ;;  %v815_v14 = vsel %vm812_vm0, %v814_v10, %v810_v13 }
 0x290   : > { %v816_v16 = vmul.f32 %v1419_v55, %v815_v14 }
 0x291   : > { %830 = vst [vmem:[%s1427_s9 + $0x68] sm:$0xff] %v786_v12 }
 0x292   : > { %832 = vst [vmem:[%s1427_s9 + $0x78] sm:$0xff] %v816_v16 }
 0x293   : > { %1110 = shalt.err (!%p1107_p3)
}
 0x294   : > { %s1147_s7 = smov 128   ;;  %s1148_s8 = smov 8  }
 0x295   : > { %976 = dma.vmem_to_hbm [thread:$0]  (%p1217_p5), %s847_s22, 2048, %s849_s14, %s834_s15, %s1147_s7, %s1147_s7, %s1148_s8  }
 0x296 PF: > { %p982_p4 = scmp.ge.s32.totalorder %s1145_s21, 2  ;;  %s863_s9 = sand.u32 1, %s1133_s18  }
 0x297   : > { %s864_s10 = scalar_lea.sflag [#allocation3], %s863_s9 }
 0x298   : > { %p979_p7 = pnand %p982_p4, %p1221_p6 }
 0x29a   : > { %p980_p8 = pneg %p979_p7 }
 0x29c   : > { %1128 = dma.done.wait (%p980_p8), %s864_s10, 2048  }
 0x29d   : > { %1130 = vsyncadd (%p980_p8), %s864_s10, 4294965248  ;;  %p15_p9 = scmp.ge.s32.totalorder %s1204_s24, 4   ;;  %s1509_s18 = smov %s1137_s19 }
 0x29e   : > { %s1510_s19 = smov %s1141_s20  ;;  %s1511_s20 = smov %s1215_s27 }
 0x29f   : > { %s1512_s21 = smov %s1204_s24  ;;  %17 = sbr.rel (!%p15_p9) target bundleno = 3 (0x3), region = 75 }
 0x2a4   :  { %870 = vsyncpa [#allocation3], 1 }
 0x2a5   :  { %872 = vsyncpa [#allocation3 + $0x1], 1 }

</bundles_post_ra>
